<compile_context>
chip_gen: v6e
topology: v6e:2x2x1
jax: 0.10.0
libtpu: 0.0.40
codegen_flags: <defaults>
</compile_context>

<pallas_src>
import functools

import jax
import jax.numpy as jnp
from jax.experimental import pallas as pl
from jax.experimental.pallas import tpu as pltpu


def _round_up(n, m):
    return (n + m - 1) // m * m


def _cdiv(a, b):
    return (a + b - 1) // b


# ---------------------------------------------------------------------------
# Kernel: one batch tile through all three layers.
#   x_ref        : (TB, d_in)    feed dtype (bf16 on the default path)
#   w1/w2/w3_ref : full weights  feed dtype
#   b1/b2/b3_ref : (1, fan_out)  f32
#   o_ref        : (TB, d_out)   f32
#   h1/h2_ref    : VMEM scratch in the feed dtype (planned spill)
# All matmuls accumulate in f32 on the MXU; bias add + ReLU stay in f32.
# ---------------------------------------------------------------------------
def _mlp_kernel(x_ref, w1_ref, b1_ref, w2_ref, b2_ref, w3_ref, b3_ref,
                o_ref, h1_ref, h2_ref):
    h1 = jnp.dot(x_ref[...], w1_ref[...], preferred_element_type=jnp.float32)
    h1_ref[...] = jnp.maximum(h1 + b1_ref[...], 0.0).astype(h1_ref.dtype)

    h2 = jnp.dot(h1_ref[...], w2_ref[...], preferred_element_type=jnp.float32)
    h2_ref[...] = jnp.maximum(h2 + b2_ref[...], 0.0).astype(h2_ref.dtype)

    out = jnp.dot(h2_ref[...], w3_ref[...], preferred_element_type=jnp.float32)
    o_ref[...] = (out + b3_ref[...]).astype(o_ref.dtype)


def _const_block_spec(shape, single_buffer):
    """Whole-array block with a constant block index: DMA'd once, reused for
    every batch tile.  Optionally single-buffered (a constant block never
    changes, so double buffering only doubles its VMEM footprint)."""
    index_map = lambda i: (0,) * len(shape)
    if single_buffer and hasattr(pl, "Buffered"):
        try:
            return pl.BlockSpec(shape, index_map, pipeline_mode=pl.Buffered(1))
        except TypeError:
            pass  # older BlockSpec without pipeline_mode: fall back
    return pl.BlockSpec(shape, index_map)


@functools.partial(jax.jit, static_argnames=("block_b",))
def _mlp_pallas(x, w1, b1, w2, b2, w3, b3, *, block_b):
    B, d_in = x.shape
    h1 = w1.shape[1]
    h2 = w2.shape[1]
    d_out = w3.shape[1]

    # x is the only per-call tensor that gets touched: cast to the MXU feed
    # dtype and zero-pad the batch up to a whole number of tiles (inside jit,
    # so it fuses into the surrounding XLA graph).
    x = x.astype(w1.dtype)
    n_tiles = _cdiv(B, block_b)
    b_pad = n_tiles * block_b
    if b_pad != B:
        x = jnp.pad(x, ((0, b_pad - B), (0, 0)))

    # Single-buffer constant parameter blocks only when they are big enough to
    # matter for VMEM (v7x: 64 MiB physical / 32 MiB scoped default).
    param_bytes = sum(int(t.size) * t.dtype.itemsize
                      for t in (w1, b1, w2, b2, w3, b3))
    single_buffer = param_bytes > (4 << 20)

    out = pl.pallas_call(
        _mlp_kernel,
        out_shape=jax.ShapeDtypeStruct((b_pad, d_out), jnp.float32),
        grid_spec=pltpu.PrefetchScalarGridSpec(
            num_scalar_prefetch=0,
            grid=(n_tiles,),
            in_specs=[
                pl.BlockSpec((block_b, d_in), lambda i: (i, 0)),   # x tile
                _const_block_spec((d_in, h1), single_buffer),      # fc1 W
                _const_block_spec((1, h1), single_buffer),         # fc1 b (f32)
                _const_block_spec((h1, h2), single_buffer),        # fc2 W
                _const_block_spec((1, h2), single_buffer),         # fc2 b (f32)
                _const_block_spec((h2, d_out), single_buffer),     # fc3 W
                _const_block_spec((1, d_out), single_buffer),      # fc3 b (f32)
            ],
            # Unpadded output: last block dim equals the full array dim (legal
            # even when not 128-aligned) -> minimal HBM writeback for small
            # d_out.  The masked store is cheap; HBM is the scarcer resource.
            out_specs=pl.BlockSpec((block_b, d_out), lambda i: (i, 0)),
            scratch_shapes=[
                pltpu.VMEM((block_b, h1), w2.dtype),   # h1 intermediate
                pltpu.VMEM((block_b, h2), w3.dtype),   # h2 intermediate
            ],
        ),
        compiler_params=pltpu.CompilerParams(
            # Independent batch tiles -> shard across TensorCores on v7x.
            dimension_semantics=("parallel",),
        ),
    )(x, w1, b1, w2, b2, w3, b3)
    return out[:B]


def _choose_block_b(B, block_b):
    """Pick the batch tile: a single 8-aligned tile for tiny B, otherwise an
    even number (>= 2) of roughly equal 8-aligned tiles (so both v7x
    TensorCores get work), capped near `block_b` rows per tile."""
    b8 = _round_up(max(B, 1), 8)
    if b8 <= 8:
        return 8
    target = max(8, _round_up(block_b, 8))
    n_tiles = max(2, 2 * _cdiv(b8, 2 * target))
    return _round_up(_cdiv(b8, n_tiles), 8)


def prepare_params(w1, b1, w2, b2, w3, b3, *, param_dtype=jnp.bfloat16):
    """One-time parameter preparation (hoisted out of the per-call path).

    Weights are cast to `param_dtype` (bf16 by default: feeds the MXU at its
    native input dtype on v5e/v6e/v7x and halves weight DMA).  Biases stay f32
    (tiny, fetched once, added in f32 anyway) and are reshaped to (1, fan_out)
    for in-kernel broadcasting.
    """
    def _bias(b):
        return jnp.asarray(b, jnp.float32).reshape(1, -1)
    return (jnp.asarray(w1, param_dtype), _bias(b1),
            jnp.asarray(w2, param_dtype), _bias(b2),
            jnp.asarray(w3, param_dtype), _bias(b3))


def regression_network_forward(x, w1, b1, w2, b2, w3, b3, *, block_b=512):
    """Forward pass of RegressionNetwork on params from `prepare_params`.

    block_b: target batch tile.  512 amortizes the ~0.35us per-grid-step
    overhead and is 128-aligned (v5e) / 256-aligned (v6e, v7x).  Ragged and
    small batches are zero-padded to 8-aligned tiles and sliced back.
    """
    B = x.shape[0]
    bb = _choose_block_b(B, block_b)
    return _mlp_pallas(x, w1, b1, w2, b2, w3, b3, block_b=bb)


def init_params(key, input_size, output_size):
    """Deterministic init mimicking nn.Linear (uniform +-1/sqrt(fan_in)).

    Weights are stored transposed vs. PyTorch, i.e. shape (fan_in, fan_out),
    so the kernel computes y = x @ W + b directly.
    """
    sizes = [(input_size, 512), (512, 256), (256, output_size)]
    params = []
    for i, (fan_in, fan_out) in enumerate(sizes):
        kw, kb = jax.random.split(jax.random.fold_in(key, i))
        bound = 1.0 / (fan_in ** 0.5)
        w = jax.random.uniform(kw, (fan_in, fan_out), jnp.float32, -bound, bound)
        b = jax.random.uniform(kb, (1, fan_out), jnp.float32, -bound, bound)
        params += [w, b]
    return params


def reference_forward(x, w1, b1, w2, b2, w3, b3):
    h = jnp.maximum(x @ w1 + b1, 0.0)
    h = jnp.maximum(h @ w2 + b2, 0.0)
    return h @ w3 + b3


if __name__ == "__main__":
    input_size = 32
    output_size = 16
    batch = 20   # deliberately ragged: exercises batch padding + multi-tile grid

    key = jax.random.PRNGKey(0)
    kx, kp = jax.random.split(key)
    x = jax.random.normal(kx, (batch, input_size), jnp.float32)
    raw_params = init_params(kp, input_size, output_size)

    ref = reference_forward(x, *raw_params)

    # f32 path: matches the PyTorch fp32 reference semantics.
    p32 = prepare_params(*raw_params, param_dtype=jnp.float32)
    out32 = jax.block_until_ready(regression_network_forward(x, *p32))
    assert out32.shape == (batch, output_size)
    assert jnp.allclose(out32, ref, atol=1e-4, rtol=1e-4), "f32 mismatch vs reference"

    # Default path: bf16-fed MXU, f32 accumulation / biases / output.
    pbf = prepare_params(*raw_params)   # param_dtype defaults to bf16
    outbf = jax.block_until_ready(regression_network_forward(x, *pbf))
    assert outbf.shape == (batch, output_size)
    assert jnp.allclose(outbf, ref, atol=1e-1, rtol=1e-1), "bf16 mismatch vs reference"

    print("KERNEL_OK")
</pallas_src>

<mosaic_0001>
module attributes {stable_mosaic.version = 11 : i64} {
  func.func @_mlp_kernel(%arg0: i32, %arg1: memref<16x32xf32, #tpu.memory_space<vmem>>, %arg2: memref<32x512xf32, #tpu.memory_space<vmem>>, %arg3: memref<1x512xf32, #tpu.memory_space<vmem>>, %arg4: memref<512x256xf32, #tpu.memory_space<vmem>>, %arg5: memref<1x256xf32, #tpu.memory_space<vmem>>, %arg6: memref<256x16xf32, #tpu.memory_space<vmem>>, %arg7: memref<1x16xf32, #tpu.memory_space<vmem>>, %arg8: memref<16x16xf32, #tpu.memory_space<vmem>>, %arg9: memref<16x512xf32, #tpu.memory_space<vmem>>, %arg10: memref<16x256xf32, #tpu.memory_space<vmem>>) attributes {dimension_semantics = [#tpu.dimension_semantics<parallel>], iteration_bounds = array<i64: 2>, scalar_prefetch = 0 : i64, scratch_operands = 2 : i64, tpu.core_type = #tpu.core_type<tc>, window_params = [{transform_indices = @transform_0, window_bounds = array<i64: 16, 32>}, {pipeline_mode = #tpu.pipeline_mode<synchronous>, transform_indices = @transform_1, window_bounds = array<i64: 32, 512>}, {pipeline_mode = #tpu.pipeline_mode<synchronous>, transform_indices = @transform_2, window_bounds = array<i64: 1, 512>}, {pipeline_mode = #tpu.pipeline_mode<synchronous>, transform_indices = @transform_3, window_bounds = array<i64: 512, 256>}, {pipeline_mode = #tpu.pipeline_mode<synchronous>, transform_indices = @transform_4, window_bounds = array<i64: 1, 256>}, {pipeline_mode = #tpu.pipeline_mode<synchronous>, transform_indices = @transform_5, window_bounds = array<i64: 256, 16>}, {pipeline_mode = #tpu.pipeline_mode<synchronous>, transform_indices = @transform_6, window_bounds = array<i64: 1, 16>}, {transform_indices = @transform_7, window_bounds = array<i64: 16, 16>}]} {
    %c0 = arith.constant 0 : index
    %c0_0 = arith.constant 0 : index
    %0 = vector.load %arg1[%c0, %c0_0] : memref<16x32xf32, #tpu.memory_space<vmem>>, vector<16x32xf32>
    %c0_1 = arith.constant 0 : index
    %c0_2 = arith.constant 0 : index
    %1 = vector.load %arg2[%c0_1, %c0_2] : memref<32x512xf32, #tpu.memory_space<vmem>>, vector<32x512xf32>
    %cst = arith.constant dense<0.000000e+00> : vector<16x512xf32>
    %2 = tpu.matmul %0, %1, %cst {dimension_numbers = #tpu.dot_dimension_numbers<[1], [0], [0], [1], [0, 0, 1, 1], [], []>} : vector<16x32xf32>, vector<32x512xf32>, vector<16x512xf32> -> vector<16x512xf32>
    %c0_3 = arith.constant 0 : index
    %c0_4 = arith.constant 0 : index
    %3 = vector.load %arg3[%c0_3, %c0_4] : memref<1x512xf32, #tpu.memory_space<vmem>>, vector<1x512xf32>
    %4 = vector.broadcast %3 : vector<1x512xf32> to vector<16x512xf32>
    %5 = arith.addf %2, %4 : vector<16x512xf32>
    %cst_5 = arith.constant 0.000000e+00 : f32
    %6 = vector.broadcast %cst_5 : f32 to vector<16x512xf32>
    %7 = arith.maximumf %5, %6 : vector<16x512xf32>
    %c0_6 = arith.constant 0 : index
    %c0_7 = arith.constant 0 : index
    %8 = vector.load %arg9[%c0_6, %c0_7] : memref<16x512xf32, #tpu.memory_space<vmem>>, vector<16x512xf32>
    tpu.vector_store %arg9[%c0_6, %c0_7], %7 {strides = array<i32>} : memref<16x512xf32, #tpu.memory_space<vmem>>, vector<16x512xf32>,
    %c0_8 = arith.constant 0 : index
    %c0_9 = arith.constant 0 : index
    %9 = vector.load %arg9[%c0_8, %c0_9] : memref<16x512xf32, #tpu.memory_space<vmem>>, vector<16x512xf32>
    %c0_10 = arith.constant 0 : index
    %c0_11 = arith.constant 0 : index
    %10 = vector.load %arg4[%c0_10, %c0_11] : memref<512x256xf32, #tpu.memory_space<vmem>>, vector<512x256xf32>
    %cst_12 = arith.constant dense<0.000000e+00> : vector<16x256xf32>
    %11 = tpu.matmul %9, %10, %cst_12 {dimension_numbers = #tpu.dot_dimension_numbers<[1], [0], [0], [1], [0, 0, 1, 1], [], []>} : vector<16x512xf32>, vector<512x256xf32>, vector<16x256xf32> -> vector<16x256xf32>
    %c0_13 = arith.constant 0 : index
    %c0_14 = arith.constant 0 : index
    %12 = vector.load %arg5[%c0_13, %c0_14] : memref<1x256xf32, #tpu.memory_space<vmem>>, vector<1x256xf32>
    %13 = vector.broadcast %12 : vector<1x256xf32> to vector<16x256xf32>
    %14 = arith.addf %11, %13 : vector<16x256xf32>
    %cst_15 = arith.constant 0.000000e+00 : f32
    %15 = vector.broadcast %cst_15 : f32 to vector<16x256xf32>
    %16 = arith.maximumf %14, %15 : vector<16x256xf32>
    %c0_16 = arith.constant 0 : index
    %c0_17 = arith.constant 0 : index
    %17 = vector.load %arg10[%c0_16, %c0_17] : memref<16x256xf32, #tpu.memory_space<vmem>>, vector<16x256xf32>
    tpu.vector_store %arg10[%c0_16, %c0_17], %16 {strides = array<i32>} : memref<16x256xf32, #tpu.memory_space<vmem>>, vector<16x256xf32>,
    %c0_18 = arith.constant 0 : index
    %c0_19 = arith.constant 0 : index
    %18 = vector.load %arg10[%c0_18, %c0_19] : memref<16x256xf32, #tpu.memory_space<vmem>>, vector<16x256xf32>
    %c0_20 = arith.constant 0 : index
    %c0_21 = arith.constant 0 : index
    %19 = vector.load %arg6[%c0_20, %c0_21] : memref<256x16xf32, #tpu.memory_space<vmem>>, vector<256x16xf32>
    %cst_22 = arith.constant dense<0.000000e+00> : vector<16x16xf32>
    %20 = tpu.matmul %18, %19, %cst_22 {dimension_numbers = #tpu.dot_dimension_numbers<[1], [0], [0], [1], [0, 0, 1, 1], [], []>} : vector<16x256xf32>, vector<256x16xf32>, vector<16x16xf32> -> vector<16x16xf32>
    %c0_23 = arith.constant 0 : index
    %c0_24 = arith.constant 0 : index
    %21 = vector.load %arg7[%c0_23, %c0_24] : memref<1x16xf32, #tpu.memory_space<vmem>>, vector<1x16xf32>
    %22 = vector.broadcast %21 : vector<1x16xf32> to vector<16x16xf32>
    %23 = arith.addf %20, %22 : vector<16x16xf32>
    %c0_25 = arith.constant 0 : index
    %c0_26 = arith.constant 0 : index
    %24 = vector.load %arg8[%c0_25, %c0_26] : memref<16x16xf32, #tpu.memory_space<vmem>>, vector<16x16xf32>
    tpu.vector_store %arg8[%c0_25, %c0_26], %23 {strides = array<i32>} : memref<16x16xf32, #tpu.memory_space<vmem>>, vector<16x16xf32>,
    return
  }
  func.func @transform_0(%arg0: i32) -> (i32, i32) {
    %c0_i32 = arith.constant 0 : i32
    %c0_i32_0 = arith.constant 0 : i32
    return %arg0, %c0_i32 : i32, i32
  }
  func.func @transform_1(%arg0: i32) -> (i32, i32) {
    %c0_i32 = arith.constant 0 : i32
    %c0_i32_0 = arith.constant 0 : i32
    %c0_i32_1 = arith.constant 0 : i32
    return %c0_i32, %c0_i32_0 : i32, i32
  }
  func.func @transform_2(%arg0: i32) -> (i32, i32) {
    %c0_i32 = arith.constant 0 : i32
    %c0_i32_0 = arith.constant 0 : i32
    %c0_i32_1 = arith.constant 0 : i32
    return %c0_i32, %c0_i32_0 : i32, i32
  }
  func.func @transform_3(%arg0: i32) -> (i32, i32) {
    %c0_i32 = arith.constant 0 : i32
    %c0_i32_0 = arith.constant 0 : i32
    %c0_i32_1 = arith.constant 0 : i32
    return %c0_i32, %c0_i32_0 : i32, i32
  }
  func.func @transform_4(%arg0: i32) -> (i32, i32) {
    %c0_i32 = arith.constant 0 : i32
    %c0_i32_0 = arith.constant 0 : i32
    %c0_i32_1 = arith.constant 0 : i32
    return %c0_i32, %c0_i32_0 : i32, i32
  }
  func.func @transform_5(%arg0: i32) -> (i32, i32) {
    %c0_i32 = arith.constant 0 : i32
    %c0_i32_0 = arith.constant 0 : i32
    %c0_i32_1 = arith.constant 0 : i32
    return %c0_i32, %c0_i32_0 : i32, i32
  }
  func.func @transform_6(%arg0: i32) -> (i32, i32) {
    %c0_i32 = arith.constant 0 : i32
    %c0_i32_0 = arith.constant 0 : i32
    %c0_i32_1 = arith.constant 0 : i32
    return %c0_i32, %c0_i32_0 : i32, i32
  }
  func.func @transform_7(%arg0: i32) -> (i32, i32) {
    %c0_i32 = arith.constant 0 : i32
    %c0_i32_0 = arith.constant 0 : i32
    return %arg0, %c0_i32 : i32, i32
  }
}

</mosaic_0001>

<bundles_post_ra>
// kernel: _mlp_pallas.1
= control target key start
LH: loop header
LB: loop body
LE: loop exit
PB: predicated region body
PF: predicated region fallthrough
CT: control target
= control target key end

     0   :  { %12 = vsyncpa [#allocation5], 0  ;;  %s1173_s24 = smov 0   ;;  %s1393_s0 = inlined_call_operand.vmem [shape: f32[32,32], index: 0, kind: input, shape index: {}]   ;;  %s1394_s1 = inlined_call_operand.vmem [shape: f32[32,512], index: 1, kind: input, shape index: {}]   ;;  %s1395_s2 = inlined_call_operand.vmem [shape: f32[1,512], index: 2, kind: input, shape index: {}]   ;;  %s1396_s3 = inlined_call_operand.hbm [shape: f32[512,256], index: 3, kind: input, shape index: {}]   ;;  %s1397_s4 = inlined_call_operand.vmem [shape: f32[1,256], index: 4, kind: input, shape index: {}]   ;;  %s1398_s5 = inlined_call_operand.vmem [shape: f32[256,16], index: 5, kind: input, shape index: {}]   ;;  %s1399_s6 = inlined_call_operand.vmem [shape: f32[1,16], index: 6, kind: input, shape index: {}]   ;;  %s1400_s7 = inlined_call_operand.vmem [shape: f32[32,16], index: 7, kind: output, shape index: {}]  }
   0x1 LB: > { %s1013_s25 = sadd.s32 4294967295, %s1127_s24   ;;  %p1015_p0 = scmp.ge.s32.totalorder %s1127_s24, 1  ;;  %s1127_s24 = sphi %s1173_s24, %s18_s24  }
   0x2   : > { %p201_p1 = scmp.lt.s32.totalorder %s1127_s24, 3  ;;  %s1129_s26 = smov [#allocation4]  }
   0x3   : > { %s219_s27 = sshll.u32 %s1129_s26, 4  ;;  %p1185_p3 = scmp.eq.s32.totalorder %s1013_s25, 0  ;;  %s220_s27 = int_to_ptr.vmem [resolvable:$true] %s219_s27 }
   0x4   : > { %p1181_p2 = pnand %p1015_p0, %p201_p1  ;;  %s1102_s30 = scalar_lea.vmem %s220_s27, 16384 }
   0x5   : > { %p1103_p7 = scmp.ne.s32.totalorder %s220_s27, %s1102_s30  ;;  %p1110_p10 = scmp.lt.s32.totalorder %s220_s27, %s220_s27 }
   0x6   : > { %p1073_p4 = pneg %p1181_p2  ;;  %p1111_p11 = scmp.lt.s32.totalorder %s1102_s30, %s1102_s30 }
   0x8   : > { %p1074_p5 = pnand %p1185_p3, %p1073_p4  ;;  %p1112_p12 = por %p1111_p11, %p1110_p10 }
   0xa   : > { %p1093_p6 = pneg %p1074_p5 }
   0xc   : > { %p1105_p8 = pnand %p1103_p7, %p1093_p6 }
   0xe   : > { %p1106_p9 = pneg %p1105_p8 }
  0x10   : > { %p1113_p13 = pnand %p1112_p12, %p1106_p9 }
  0x12   : > { %1116 = shalt.err (!%p1113_p13)
}
  0x13   : > { %s1130_s8 = smov 256   ;;  %s1131_s9 = smov 16  }
  0x14   : > { %1076 = dma.hbm_to_vmem [thread:$0]  (!%p1074_p5), %s1396_s3, 16384, %s220_s27, [#allocation5], %s1130_s8, %s1130_s8, %s1131_s9  }
  0x15   : > { %253 = sbr.rel (%p1181_p2) target bundleno = 648 (0x288), region = 48 }
  0x1a   : > { %1122 = dma.done.wait (%p1185_p3), [#allocation5], 16384  }
  0x1b   : > { %1124 = vsyncadd (%p1185_p3), [#allocation5], 4294950912  ;;  %s1020_s12 = sshll.u32 %s1013_s25, 1  ;;  %v1132_v0 = vmov 0.0   ;;  %v312_v1 = vld [vmem:[%s1394_s1 + $0x68] sm:$0xff]  ;;  %v311_v2 = vld [vmem:[%s1394_s1 + $0x60] sm:$0xff] }
  0x1c   : > { %408 = vmatprep.mubr.f32.mxu1 %v1132_v0  ;;  %p286_p0 = scmp.lt.s32.totalorder %s1020_s12, 3  ;;  %v308_v3 = vld [vmem:[%s1394_s1 + $0x48] sm:$0xff]  ;;  %368 = vmatprep.subr.mxu1 %v312_v1  ;;  %v307_v4 = vld [vmem:[%s1394_s1 + $0x40] sm:$0xff]  ;;  %vm337_vm0 = vcmask 261120   ;;  %v314_v10 = vld [vmem:[%s1394_s1 + $0x78] sm:$0xff]  ;;  %vm942_vm1 = vcmask 130048  }
  0x1d   : > { %369 = vmatpush1.msra.mxu1 %v311_v2  ;;  %v304_v5 = vld [vmem:[%s1394_s1 + $0x28] sm:$0xff]  ;;  %v303_v6 = vld [vmem:[%s1394_s1 + $0x20] sm:$0xff]  ;;  %v553_v11 = vld [vmem:[#allocation4 + $0xf8] sm:$0xff] }
  0x1e   : > { %s1404_s12 = smov (!%p286_p0, %s1020_s12), 3  ;;  %370 = vmatprep.subr.mxu1 %v308_v3  ;;  %v300_v7 = vld [vmem:[%s1394_s1 + $0x8] sm:$0xff]  ;;  %v299_v8 = vld [vmem:[%s1394_s1] sm:$0xff]  ;;  %v552_v12 = vld [vmem:[#allocation4 + $0xf0] sm:$0xff]  ;;  %662 = vmatprep.subr.mxu0 %v553_v11 }
  0x1f   : > { %s1021_s13 = sshll.u32 %s1404_s12, 3  ;;  %371 = vmatpush1.msra.mxu1 %v307_v4  ;;  %v313_v13 = vld [vmem:[%s1394_s1 + $0x70] sm:$0xff]  ;;  %v310_v14 = vld [vmem:[%s1394_s1 + $0x58] sm:$0xff]  ;;  %663 = vmatpush1.msra.mxu0 %v552_v12  ;;  %v551_v15 = vld [vmem:[#allocation4 + $0xe8] sm:$0xff] }
  0x20   : > { %s289_s27 = scalar_lea.vmem %s1393_s0, %s1021_s13  ;;  %372 = vmatprep.subr.mxu1 %v304_v5  ;;  %v309_v16 = vld [vmem:[%s1394_s1 + $0x50] sm:$0xff]  ;;  %v550_v17 = vld [vmem:[#allocation4 + $0xe0] sm:$0xff]  ;;  %v306_v19 = vld [vmem:[%s1394_s1 + $0x38] sm:$0xff]  ;;  %664 = vmatprep.subr.mxu0 %v551_v15  ;;  %s295_s21 = scalar_lea.vmem %s1400_s7, %s1021_s13 }
  0x21   : > { %v297_v9 = vld [vmem:[%s289_s27] sm:$0xff]  ;;  %373 = vmatpush1.msra.mxu1 %v303_v6  ;;  %v298_v18 = vld [vmem:[%s289_s27 + $0x8] sm:$0xff]  ;;  %v305_v20 = vld [vmem:[%s1394_s1 + $0x30] sm:$0xff]  ;;  %665 = vmatpush1.msra.mxu0 %v550_v17 }
  0x22   : > { %374 = vmatprep.subr.mxu1 %v300_v7  ;;  %v302_v21 = vld [vmem:[%s1394_s1 + $0x18] sm:$0xff]  ;;  %v301_v23 = vld [vmem:[%s1394_s1 + $0x10] sm:$0xff]  ;;  %v547_v25 = vld [vmem:[#allocation4 + $0xc8] sm:$0xff] }
  0x23   : > { %375 = vmatpush1.msra.mxu1 %v299_v8  ;;  %v549_v22 = vld [vmem:[#allocation4 + $0xd8] sm:$0xff]  ;;  %v548_v24 = vld [vmem:[#allocation4 + $0xd0] sm:$0xff]  ;;  %v546_v26 = vld [vmem:[#allocation4 + $0xc0] sm:$0xff] }
  0x24   : > { %1024 = vmatmul.mubr.msk.f32.vlgmr.msra.gmra.mxu1 %vm337_vm0, %v297_v9  ;;  %445 = vmatprep.subr.mxu1 %v314_v10  ;;  %v545_v27 = vld [vmem:[#allocation4 + $0xb8] sm:$0xff]  ;;  %v544_v29 = vld [vmem:[#allocation4 + $0xb0] sm:$0xff]  ;;  %v543_v31 = vld [vmem:[#allocation4 + $0xa8] sm:$0xff] }
  0x25   : > { %446 = vmatpush1.msra.mxu1 %v313_v13  ;;  %414 = vmatprep.mubr.f32.mxu1 %v1132_v0  ;;  %v617_v28 = vld [vmem:[#allocation4 + $0x2f8] sm:$0xff]  ;;  %v616_v30 = vld [vmem:[#allocation4 + $0x2f0] sm:$0xff]  ;;  %v615_v32 = vld [vmem:[#allocation4 + $0x2e8] sm:$0xff] }
  0x26   : > { %447 = vmatprep.subr.mxu1 %v310_v14  ;;  %666 = vmatprep.subr.mxu0 %v549_v22  ;;  %v542_v33 = vld [vmem:[#allocation4 + $0xa0] sm:$0xff]  ;;  %v541_v35 = vld [vmem:[#allocation4 + $0x98] sm:$0xff]  ;;  %v540_v37 = vld [vmem:[#allocation4 + $0x90] sm:$0xff] }
  0x27   : > { %448 = vmatpush1.msra.mxu1 %v309_v16  ;;  %667 = vmatpush1.msra.mxu0 %v548_v24  ;;  %v614_v34 = vld [vmem:[#allocation4 + $0x2e0] sm:$0xff]  ;;  %v613_v36 = vld [vmem:[#allocation4 + $0x2d8] sm:$0xff]  ;;  %v612_v38 = vld [vmem:[#allocation4 + $0x2d0] sm:$0xff] }
  0x28   : > { %1025 = vmatmul.mubr.msk.f32.gmra.mxu1 %vm337_vm0, %v298_v18  ;;  %449 = vmatprep.subr.mxu1 %v306_v19  ;;  %v539_v39 = vld [vmem:[#allocation4 + $0x88] sm:$0xff]  ;;  %v538_v41 = vld [vmem:[#allocation4 + $0x80] sm:$0xff]  ;;  %v537_v43 = vld [vmem:[#allocation4 + $0x78] sm:$0xff] }
  0x29   : > { %450 = vmatpush1.msra.mxu1 %v305_v20  ;;  %485 = vmatprep.mubr.f32.mxu1 %v1132_v0  ;;  %v611_v40 = vld [vmem:[#allocation4 + $0x2c8] sm:$0xff]  ;;  %v610_v42 = vld [vmem:[#allocation4 + $0x2c0] sm:$0xff]  ;;  %v609_v44 = vld [vmem:[#allocation4 + $0x2b8] sm:$0xff] }
  0x2a   : > { %451 = vmatprep.subr.mxu1 %v302_v21  ;;  %668 = vmatprep.subr.mxu0 %v547_v25  ;;  %v536_v45 = vld [vmem:[#allocation4 + $0x70] sm:$0xff]  ;;  %v535_v47 = vld [vmem:[#allocation4 + $0x68] sm:$0xff]  ;;  %v534_v49 = vld [vmem:[#allocation4 + $0x60] sm:$0xff] }
  0x2b   : > { %452 = vmatpush1.msra.mxu1 %v301_v23  ;;  %669 = vmatpush1.msra.mxu0 %v546_v26  ;;  %v608_v46 = vld [vmem:[#allocation4 + $0x2b0] sm:$0xff]  ;;  %v607_v48 = vld [vmem:[#allocation4 + $0x2a8] sm:$0xff]  ;;  %v606_v50 = vld [vmem:[#allocation4 + $0x2a0] sm:$0xff] }
  0x2c   : > { %1026 = vmatmul.mubr.msk.f32.vlgmr.msra.gmra.mxu1 %vm337_vm0, %v297_v9  ;;  %670 = vmatprep.subr.mxu0 %v545_v27  ;;  %v533_v51 = vld [vmem:[#allocation4 + $0x58] sm:$0xff]  ;;  %v532_v53 = vld [vmem:[#allocation4 + $0x50] sm:$0xff]  ;;  %v531_v55 = vld [vmem:[#allocation4 + $0x48] sm:$0xff] }
  0x2d   : > { %491 = vmatprep.mubr.f32.mxu1 %v1132_v0  ;;  %739 = vmatprep.subr.mxu1 %v617_v28  ;;  %v605_v52 = vld [vmem:[#allocation4 + $0x298] sm:$0xff]  ;;  %v604_v54 = vld [vmem:[#allocation4 + $0x290] sm:$0xff]  ;;  %v603_v56 = vld [vmem:[#allocation4 + $0x288] sm:$0xff] }
  0x2e   : > { %671 = vmatpush1.msra.mxu0 %v544_v29  ;;  %740 = vmatpush1.msra.mxu1 %v616_v30  ;;  %v530_v57 = vld [vmem:[#allocation4 + $0x40] sm:$0xff]  ;;  %v529_v59 = vld [vmem:[#allocation4 + $0x38] sm:$0xff]  ;;  %v528_v61 = vld [vmem:[#allocation4 + $0x30] sm:$0xff] }
  0x2f   : > { %672 = vmatprep.subr.mxu0 %v543_v31  ;;  %741 = vmatprep.subr.mxu1 %v615_v32  ;;  %v602_v58 = vld [vmem:[#allocation4 + $0x280] sm:$0xff]  ;;  %v601_v60 = vld [vmem:[#allocation4 + $0x278] sm:$0xff]  ;;  %v600_v62 = vld [vmem:[#allocation4 + $0x270] sm:$0xff] }
  0x30   : > { %1027 = vmatmul.mubr.msk.f32.gmra.mxu1 %vm337_vm0, %v298_v18  ;;  %673 = vmatpush1.msra.mxu0 %v542_v33  ;;  %v527_v63 = vld [vmem:[#allocation4 + $0x28] sm:$0xff]  ;;  %v526_v1 = vld [vmem:[#allocation4 + $0x20] sm:$0xff]  ;;  %v525_v3 = vld [vmem:[#allocation4 + $0x18] sm:$0xff] }
  0x31   : > { %742 = vmatpush1.msra.mxu1 %v614_v34  ;;  %674 = vmatprep.subr.mxu0 %v541_v35  ;;  %v599_v0 = vld [vmem:[#allocation4 + $0x268] sm:$0xff]  ;;  %v598_v2 = vld [vmem:[#allocation4 + $0x260] sm:$0xff]  ;;  %v597_v4 = vld [vmem:[#allocation4 + $0x258] sm:$0xff] }
  0x32   : > { %743 = vmatprep.subr.mxu1 %v613_v36  ;;  %675 = vmatpush1.msra.mxu0 %v540_v37  ;;  %v524_v5 = vld [vmem:[#allocation4 + $0x10] sm:$0xff]  ;;  %v523_v7 = vld [vmem:[#allocation4 + $0x8] sm:$0xff]  ;;  %v522_v9 = vld [vmem:[#allocation4] sm:$0xff] }
  0x33   : > { %744 = vmatpush1.msra.mxu1 %v612_v38  ;;  %676 = vmatprep.subr.mxu0 %v539_v39  ;;  %v596_v6 = vld [vmem:[#allocation4 + $0x250] sm:$0xff]  ;;  %v595_v8 = vld [vmem:[#allocation4 + $0x248] sm:$0xff]  ;;  %v594_v10 = vld [vmem:[#allocation4 + $0x240] sm:$0xff] }
  0x34   : > { %745 = vmatprep.subr.mxu1 %v611_v40  ;;  %677 = vmatpush1.msra.mxu0 %v538_v41  ;;  %v585_v11 = vld [vmem:[#allocation4 + $0x1f8] sm:$0xff]  ;;  %v584_v13 = vld [vmem:[#allocation4 + $0x1f0] sm:$0xff]  ;;  %v583_v15 = vld [vmem:[#allocation4 + $0x1e8] sm:$0xff] }
  0x35   : > { %746 = vmatpush1.msra.mxu1 %v610_v42  ;;  %678 = vmatprep.subr.mxu0 %v537_v43  ;;  %v593_v12 = vld [vmem:[#allocation4 + $0x238] sm:$0xff]  ;;  %v592_v14 = vld [vmem:[#allocation4 + $0x230] sm:$0xff]  ;;  %v591_v16 = vld [vmem:[#allocation4 + $0x228] sm:$0xff] }
  0x36   : > { %747 = vmatprep.subr.mxu1 %v609_v44  ;;  %679 = vmatpush1.msra.mxu0 %v536_v45  ;;  %v582_v17 = vld [vmem:[#allocation4 + $0x1e0] sm:$0xff]  ;;  %v581_v19 = vld [vmem:[#allocation4 + $0x1d8] sm:$0xff]  ;;  %v580_v21 = vld [vmem:[#allocation4 + $0x1d0] sm:$0xff] }
  0x37   : > { %748 = vmatpush1.msra.mxu1 %v608_v46  ;;  %680 = vmatprep.subr.mxu0 %v535_v47  ;;  %v590_v18 = vld [vmem:[#allocation4 + $0x220] sm:$0xff]  ;;  %v589_v20 = vld [vmem:[#allocation4 + $0x218] sm:$0xff]  ;;  %v588_v22 = vld [vmem:[#allocation4 + $0x210] sm:$0xff] }
  0x38   : > { %749 = vmatprep.subr.mxu1 %v607_v48  ;;  %681 = vmatpush1.msra.mxu0 %v534_v49  ;;  %v579_v23 = vld [vmem:[#allocation4 + $0x1c8] sm:$0xff]  ;;  %v578_v25 = vld [vmem:[#allocation4 + $0x1c0] sm:$0xff]  ;;  %v577_v27 = vld [vmem:[#allocation4 + $0x1b8] sm:$0xff] }
  0x39   : > { %750 = vmatpush1.msra.mxu1 %v606_v50  ;;  %682 = vmatprep.subr.mxu0 %v533_v51  ;;  %v587_v24 = vld [vmem:[#allocation4 + $0x208] sm:$0xff]  ;;  %v586_v26 = vld [vmem:[#allocation4 + $0x200] sm:$0xff]  ;;  %v649_v28 = vld [vmem:[#allocation4 + $0x3f8] sm:$0xff] }
  0x3a   : > { %751 = vmatprep.subr.mxu1 %v605_v52  ;;  %683 = vmatpush1.msra.mxu0 %v532_v53  ;;  %v576_v29 = vld [vmem:[#allocation4 + $0x1b0] sm:$0xff]  ;;  %v575_v31 = vld [vmem:[#allocation4 + $0x1a8] sm:$0xff]  ;;  %v574_v33 = vld [vmem:[#allocation4 + $0x1a0] sm:$0xff] }
  0x3b   : > { %752 = vmatpush1.msra.mxu1 %v604_v54  ;;  %684 = vmatprep.subr.mxu0 %v531_v55  ;;  %v648_v30 = vld [vmem:[#allocation4 + $0x3f0] sm:$0xff]  ;;  %v647_v32 = vld [vmem:[#allocation4 + $0x3e8] sm:$0xff]  ;;  %v646_v34 = vld [vmem:[#allocation4 + $0x3e0] sm:$0xff] }
  0x3c   : > { %753 = vmatprep.subr.mxu1 %v603_v56  ;;  %685 = vmatpush1.msra.mxu0 %v530_v57  ;;  %v573_v35 = vld [vmem:[#allocation4 + $0x198] sm:$0xff]  ;;  %v572_v37 = vld [vmem:[#allocation4 + $0x190] sm:$0xff]  ;;  %v571_v39 = vld [vmem:[#allocation4 + $0x188] sm:$0xff] }
  0x3d   : > { %754 = vmatpush1.msra.mxu1 %v602_v58  ;;  %686 = vmatprep.subr.mxu0 %v529_v59  ;;  %v645_v36 = vld [vmem:[#allocation4 + $0x3d8] sm:$0xff]  ;;  %v644_v38 = vld [vmem:[#allocation4 + $0x3d0] sm:$0xff]  ;;  %v643_v40 = vld [vmem:[#allocation4 + $0x3c8] sm:$0xff] }
  0x3e   : > { %755 = vmatprep.subr.mxu1 %v601_v60  ;;  %687 = vmatpush1.msra.mxu0 %v528_v61  ;;  %v570_v41 = vld [vmem:[#allocation4 + $0x180] sm:$0xff]  ;;  %v569_v43 = vld [vmem:[#allocation4 + $0x178] sm:$0xff]  ;;  %v568_v45 = vld [vmem:[#allocation4 + $0x170] sm:$0xff] }
  0x3f   : > { %756 = vmatpush1.msra.mxu1 %v600_v62  ;;  %688 = vmatprep.subr.mxu0 %v527_v63  ;;  %v642_v42 = vld [vmem:[#allocation4 + $0x3c0] sm:$0xff]  ;;  %v641_v44 = vld [vmem:[#allocation4 + $0x3b8] sm:$0xff]  ;;  %v640_v46 = vld [vmem:[#allocation4 + $0x3b0] sm:$0xff] }
  0x40   : > { %757 = vmatprep.subr.mxu1 %v599_v0  ;;  %689 = vmatpush1.msra.mxu0 %v526_v1  ;;  %v567_v47 = vld [vmem:[#allocation4 + $0x168] sm:$0xff]  ;;  %v566_v49 = vld [vmem:[#allocation4 + $0x160] sm:$0xff]  ;;  %v565_v51 = vld [vmem:[#allocation4 + $0x158] sm:$0xff] }
  0x41   : > { %758 = vmatpush1.msra.mxu1 %v598_v2  ;;  %690 = vmatprep.subr.mxu0 %v525_v3  ;;  %v639_v48 = vld [vmem:[#allocation4 + $0x3a8] sm:$0xff]  ;;  %v638_v50 = vld [vmem:[#allocation4 + $0x3a0] sm:$0xff]  ;;  %v637_v52 = vld [vmem:[#allocation4 + $0x398] sm:$0xff] }
  0x42   : > { %759 = vmatprep.subr.mxu1 %v597_v4  ;;  %691 = vmatpush1.msra.mxu0 %v524_v5  ;;  %v564_v53 = vld [vmem:[#allocation4 + $0x150] sm:$0xff]  ;;  %v563_v55 = vld [vmem:[#allocation4 + $0x148] sm:$0xff]  ;;  %v562_v57 = vld [vmem:[#allocation4 + $0x140] sm:$0xff] }
  0x43   : > { %760 = vmatpush1.msra.mxu1 %v596_v6  ;;  %692 = vmatprep.subr.mxu0 %v523_v7  ;;  %v636_v54 = vld [vmem:[#allocation4 + $0x390] sm:$0xff]  ;;  %v635_v56 = vld [vmem:[#allocation4 + $0x388] sm:$0xff]  ;;  %v634_v58 = vld [vmem:[#allocation4 + $0x380] sm:$0xff] }
  0x44   : > { %761 = vmatprep.subr.mxu1 %v595_v8  ;;  %693 = vmatpush1.msra.mxu0 %v522_v9  ;;  %v561_v59 = vld [vmem:[#allocation4 + $0x138] sm:$0xff]  ;;  %v560_v61 = vld [vmem:[#allocation4 + $0x130] sm:$0xff]  ;;  %v559_v63 = vld [vmem:[#allocation4 + $0x128] sm:$0xff] }
  0x45   : > { %762 = vmatpush1.msra.mxu1 %v594_v10  ;;  %694 = vmatprep.subr.mxu0 %v585_v11  ;;  %v633_v60 = vld [vmem:[#allocation4 + $0x378] sm:$0xff]  ;;  %v632_v62 = vld [vmem:[#allocation4 + $0x370] sm:$0xff]  ;;  %v631_v0 = vld [vmem:[#allocation4 + $0x368] sm:$0xff] }
  0x46   : > { %763 = vmatprep.subr.mxu1 %v593_v12  ;;  %695 = vmatpush2.msra.mxu0 %v584_v13  ;;  %v558_v1 = vld [vmem:[#allocation4 + $0x120] sm:$0xff]  ;;  %v557_v3 = vld [vmem:[#allocation4 + $0x118] sm:$0xff]  ;;  %v556_v5 = vld [vmem:[#allocation4 + $0x110] sm:$0xff] }
  0x47   : > { %764 = vmatpush1.msra.mxu1 %v592_v14  ;;  %696 = vmatprep.subr.mxu0 %v583_v15  ;;  %v630_v2 = vld [vmem:[#allocation4 + $0x360] sm:$0xff]  ;;  %v629_v4 = vld [vmem:[#allocation4 + $0x358] sm:$0xff]  ;;  %v628_v6 = vld [vmem:[#allocation4 + $0x350] sm:$0xff] }
  0x48   : > { %765 = vmatprep.subr.mxu1 %v591_v16  ;;  %697 = vmatpush2.msra.mxu0 %v582_v17  ;;  %v555_v7 = vld [vmem:[#allocation4 + $0x108] sm:$0xff]  ;;  %v554_v9 = vld [vmem:[#allocation4 + $0x100] sm:$0xff]  ;;  %v625_v11 = vld [vmem:[#allocation4 + $0x338] sm:$0xff] }
  0x49   : > { %766 = vmatpush1.msra.mxu1 %v590_v18  ;;  %698 = vmatprep.subr.mxu0 %v581_v19  ;;  %v627_v8 = vld [vmem:[#allocation4 + $0x348] sm:$0xff]  ;;  %v626_v10 = vld [vmem:[#allocation4 + $0x340] sm:$0xff]  ;;  %v624_v12 = vld [vmem:[#allocation4 + $0x330] sm:$0xff] }
  0x4a   : > { %767 = vmatprep.subr.mxu1 %v589_v20  ;;  %699 = vmatpush2.msra.mxu0 %v580_v21  ;;  %v623_v13 = vld [vmem:[#allocation4 + $0x328] sm:$0xff]  ;;  %v622_v14 = vld [vmem:[#allocation4 + $0x320] sm:$0xff]  ;;  %v621_v15 = vld [vmem:[#allocation4 + $0x318] sm:$0xff]  ;;  %v317_v20 = vlaneseq }
  0x4b   : > { %768 = vmatpush1.msra.mxu1 %v588_v22  ;;  %700 = vmatprep.subr.mxu0 %v579_v23  ;;  %v620_v16 = vld [vmem:[#allocation4 + $0x310] sm:$0xff]  ;;  %v619_v17 = vld [vmem:[#allocation4 + $0x308] sm:$0xff]  ;;  %v618_v18 = vld [vmem:[#allocation4 + $0x300] sm:$0xff] }
  0x4c   : > { %769 = vmatprep.subr.mxu1 %v587_v24  ;;  %701 = vmatpush2.msra.mxu0 %v578_v25  ;;  %v859_v19 = vld [vmem:[%s1398_s5 + $0xf8] sm:$0xff]  ;;  %v1269_v21 = vshrl.u32 %v317_v20, 7  ;;  %v315_v23 = vld [vmem:[%s1395_s2] sm:$0xf] }
  0x4d   : > { %770 = vmatpush1.msra.mxu1 %v586_v26  ;;  %702 = vmatprep.subr.mxu0 %v577_v27  ;;  %v844_v20 = vld [vmem:[%s1398_s5 + $0x80] sm:$0xff] }
  0x4e   : > { %771 = vmatprep.subr.mxu1 %v649_v28  ;;  %703 = vmatpush2.msra.mxu0 %v576_v29  ;;  %v319_v22 = vsub.s32 0, %v1269_v21  ;;  %v323_v24 = vsub.s32 1, %v1269_v21 }
  0x4f   : > { %772 = vmatpush2.msra.mxu1 %v648_v30  ;;  %704 = vmatprep.subr.mxu0 %v575_v31  ;;  %v327_v30 = vsub.s32 2, %v1269_v21 }
  0x50   : > { %773 = vmatprep.subr.mxu1 %v647_v32  ;;  %705 = vmatpush2.msra.mxu0 %v574_v33  ;;  %v320_v25 = vrot.slane %v315_v23, %v319_v22  ;;  %v324_v26 = vrot.slane %v315_v23, %v323_v24  ;;  %v331_v32 = vsub.s32 3, %v1269_v21 }
  0x51   : > { %774 = vmatpush2.msra.mxu1 %v646_v34  ;;  %706 = vmatprep.subr.mxu0 %v573_v35 }
  0x52   : > { %775 = vmatprep.subr.mxu1 %v645_v36  ;;  %707 = vmatpush2.msra.mxu0 %v572_v37 }
  0x53   : > { %776 = vmatpush2.msra.mxu1 %v644_v38  ;;  %708 = vmatprep.subr.mxu0 %v571_v39  ;;  %v328_v38 = vrot.slane %v315_v23, %v327_v30  ;;  %v843_v39 = vld [vmem:[%s1398_s5 + $0x78] sm:$0xff] }
  0x54   : > { %777 = vmatprep.subr.mxu1 %v643_v40  ;;  %709 = vmatpush2.msra.mxu0 %v570_v41  ;;  %v332_v41 = vrot.slane %v315_v23, %v331_v32  ;;  %v828_v23 = vld [vmem:[%s1398_s5] sm:$0xff] }
  0x55   : > { %778 = vmatpush2.msra.mxu1 %v642_v42  ;;  %710 = vmatprep.subr.mxu0 %v569_v43  ;;  %v858_v42 = vld [vmem:[%s1398_s5 + $0xf0] sm:$0xff] }
  0x56   : > { %779 = vmatprep.subr.mxu1 %v641_v44  ;;  %711 = vmatpush2.msra.mxu0 %v568_v45  ;;  %v842_v44 = vld [vmem:[%s1398_s5 + $0x70] sm:$0xff] }
  0x57   : > { %780 = vmatpush2.msra.mxu1 %v640_v46  ;;  %712 = vmatprep.subr.mxu0 %v567_v47  ;;  %v857_v46 = vld [vmem:[%s1398_s5 + $0xe8] sm:$0xff] }
  0x58   : > { %781 = vmatprep.subr.mxu1 %v639_v48  ;;  %713 = vmatpush2.msra.mxu0 %v566_v49 }
  0x59   : > { %782 = vmatpush2.msra.mxu1 %v638_v50  ;;  %714 = vmatprep.subr.mxu0 %v565_v51  ;;  %v841_v50 = vld [vmem:[%s1398_s5 + $0x68] sm:$0xff] }
  0x5a   : > { %783 = vmatprep.subr.mxu1 %v637_v52  ;;  %715 = vmatpush2.msra.mxu0 %v564_v53  ;;  %v856_v52 = vld [vmem:[%s1398_s5 + $0xe0] sm:$0xff] }
  0x5b   : > { %784 = vmatpush2.msra.mxu1 %v636_v54  ;;  %716 = vmatprep.subr.mxu0 %v563_v55  ;;  %v840_v54 = vld [vmem:[%s1398_s5 + $0x60] sm:$0xff] }
  0x5c   : > { %785 = vmatprep.subr.mxu1 %v635_v56  ;;  %717 = vmatpush2.msra.mxu0 %v562_v57  ;;  %v855_v56 = vld [vmem:[%s1398_s5 + $0xd8] sm:$0xff] }
  0x5d   : > { %786 = vmatpush2.msra.mxu1 %v634_v58  ;;  %718 = vmatprep.subr.mxu0 %v561_v59 }
  0x5e   : > { %787 = vmatprep.subr.mxu1 %v633_v60  ;;  %719 = vmatpush2.msra.mxu0 %v560_v61  ;;  %v839_v60 = vld [vmem:[%s1398_s5 + $0x58] sm:$0xff] }
  0x5f   : > { %788 = vmatpush2.msra.mxu1 %v632_v62  ;;  %720 = vmatprep.subr.mxu0 %v559_v63  ;;  %v854_v62 = vld [vmem:[%s1398_s5 + $0xd0] sm:$0xff] }
  0x60   : > { %789 = vmatprep.subr.mxu1 %v631_v0  ;;  %721 = vmatpush2.msra.mxu0 %v558_v1  ;;  %v838_v63 = vld [vmem:[%s1398_s5 + $0x50] sm:$0xff]  ;;  %v853_v1 = vld [vmem:[%s1398_s5 + $0xc8] sm:$0xff] }
  0x61   : > { %790 = vmatpush2.msra.mxu1 %v630_v2  ;;  %722 = vmatprep.subr.mxu0 %v557_v3  ;;  %v837_v3 = vld [vmem:[%s1398_s5 + $0x48] sm:$0xff] }
  0x62   : > { %791 = vmatprep.subr.mxu1 %v629_v4  ;;  %723 = vmatpush2.msra.mxu0 %v556_v5  ;;  %v852_v4 = vld [vmem:[%s1398_s5 + $0xc0] sm:$0xff] }
  0x63   : > { %792 = vmatpush2.msra.mxu1 %v628_v6  ;;  %724 = vmatprep.subr.mxu0 %v555_v7  ;;  %v836_v5 = vld [vmem:[%s1398_s5 + $0x40] sm:$0xff]  ;;  %v851_v6 = vld [vmem:[%s1398_s5 + $0xb8] sm:$0xff] }
  0x64   : > { %793 = vmatprep.subr.mxu1 %v627_v8  ;;  %725 = vmatpush2.msra.mxu0 %v554_v9  ;;  %v835_v7 = vld [vmem:[%s1398_s5 + $0x38] sm:$0xff]  ;;  %v850_v8 = vld [vmem:[%s1398_s5 + $0xb0] sm:$0xff] }
  0x65   : > { %794 = vmatpush2.msra.mxu1 %v626_v10  ;;  %1031 = vmatprep.subr.mxu0 %v859_v19  ;;  %v834_v9 = vld [vmem:[%s1398_s5 + $0x30] sm:$0xff]  ;;  %v849_v10 = vld [vmem:[%s1398_s5 + $0xa8] sm:$0xff] }
  0x66   : > { %795 = vmatprep.subr.mxu1 %v625_v11  ;;  %v833_v11 = vld [vmem:[%s1398_s5 + $0x28] sm:$0xff] }
  0x67   : > { %796 = vmatpush2.msra.mxu1 %v624_v12  ;;  %v848_v12 = vld [vmem:[%s1398_s5 + $0xa0] sm:$0xff]  ;;  %v829_v19 = vld [vmem:[%s1398_s5 + $0x8] sm:$0xff] }
  0x68   : > { %797 = vmatprep.subr.mxu1 %v623_v13  ;;  %v832_v13 = vld [vmem:[%s1398_s5 + $0x20] sm:$0xff] }
  0x69   : > { %798 = vmatpush2.msra.mxu1 %v622_v14  ;;  %v847_v14 = vld [vmem:[%s1398_s5 + $0x98] sm:$0xff] }
  0x6a   : > { %799 = vmatprep.subr.mxu1 %v621_v15  ;;  %v831_v15 = vld [vmem:[%s1398_s5 + $0x18] sm:$0xff] }
  0x6b   : > { %800 = vmatpush2.msra.mxu1 %v620_v16  ;;  %v846_v16 = vld [vmem:[%s1398_s5 + $0x90] sm:$0xff] }
  0x6c   : > { %801 = vmatprep.subr.mxu1 %v619_v17  ;;  %v830_v17 = vld [vmem:[%s1398_s5 + $0x10] sm:$0xff] }
  0x6d   : > { %802 = vmatpush2.msra.mxu1 %v618_v18  ;;  %v845_v18 = vld [vmem:[%s1398_s5 + $0x88] sm:$0xff] }
  0xe4   : > { %v410_v27 = vpop.f32.mrf.mxu1 }
  0xe5   : > { %v411_v28 = vadd.f32 %v410_v27, %v320_v25 }
  0xe6   : > { %v412_v29 = vpop.f32.mrf.mxu1 }
  0xe7   : > { %v413_v31 = vadd.f32 %v412_v29, %v324_v26  ;;  %v498_v35 = vmax.f32 %v411_v28, 0.0 }
  0xe8   : > { %v416_v33 = vpop.f32.mrf.mxu1 }
  0xe9   : > { %v499_v34 = vmax.f32 %v413_v31, 0.0  ;;  %v417_v36 = vadd.f32 %v416_v33, %v320_v25 }
  0xea   : > { %v418_v37 = vpop.f32.mrf.mxu1 }
  0xeb   : > { %v419_v40 = vadd.f32 %v418_v37, %v324_v26  ;;  %726 = vmatprep.mubr.f32.mxu0 %v499_v34  ;;  %v502_v47 = vmax.f32 %v417_v36, 0.0  ;;  %v650_v26 = vld [vmem:[%s1397_s4] sm:$0x3] }
  0xec   : > { %v487_v43 = vpop.f32.mrf.mxu1  ;;  %727 = vmatmul.mubr.f32.vlgmr.msra.gmra.mxu0 %v498_v35  ;;  %v655_v28 = vrot.slane %v650_v26, %v319_v22  ;;  %v659_v29 = vrot.slane %v650_v26, %v323_v24 }
  0xed   : > { %v503_v45 = vmax.f32 %v419_v40, 0.0  ;;  %1032 = vmatpush3.msra.mxu0 %v843_v39  ;;  %v488_v48 = vadd.f32 %v487_v43, %v328_v38 }
  0xee   : > { %v489_v49 = vpop.f32.mrf.mxu1  ;;  %1033 = vmatprep.subr.mxu0 %v858_v42 }
  0xef   : > { %v490_v51 = vadd.f32 %v489_v49, %v332_v41  ;;  %732 = vmatprep.mubr.f32.mxu0 %v503_v45  ;;  %1034 = vmatpush3.msra.mxu0 %v842_v44  ;;  %v500_v57 = vmax.f32 %v488_v48, 0.0 }
  0xf0   : > { %v493_v53 = vpop.f32.mrf.mxu1  ;;  %733 = vmatmul.mubr.f32.gmra.mxu0 %v502_v47  ;;  %1035 = vmatprep.subr.mxu0 %v857_v46  ;;  %v1028_v46 = vld [vmem:[%s1399_s6] ss:$0 sm:$0xff] }
  0xf1   : > { %v501_v55 = vmax.f32 %v490_v51, 0.0  ;;  %1036 = vmatpush3.msra.mxu0 %v841_v50  ;;  %v494_v58 = vadd.f32 %v493_v53, %v328_v38 }
  0xf2   : > { %v495_v59 = vpop.f32.mrf.mxu1  ;;  %1037 = vmatprep.subr.mxu0 %v856_v52 }
  0xf3   : > { %v496_v61 = vadd.f32 %v495_v59, %v332_v41  ;;  %803 = vmatprep.mubr.f32.mxu1 %v501_v55  ;;  %1038 = vmatpush3.msra.mxu0 %v840_v54  ;;  %v504_v2 = vmax.f32 %v494_v58, 0.0 }
  0xf4   : > { %804 = vmatmul.mubr.f32.vlgmr.msra.gmra.mxu1 %v500_v57  ;;  %1039 = vmatprep.subr.mxu0 %v855_v56 }
  0xf5   : > { %v505_v0 = vmax.f32 %v496_v61, 0.0  ;;  %1040 = vmatpush3.msra.mxu0 %v839_v60 }
  0xf6   : > { %1041 = vmatprep.subr.mxu0 %v854_v62 }
  0xf7   : > { %809 = vmatprep.mubr.f32.mxu1 %v505_v0  ;;  %1042 = vmatpush3.msra.mxu0 %v838_v63 }
  0xf8   : > { %810 = vmatmul.mubr.f32.gmra.mxu1 %v504_v2  ;;  %1043 = vmatprep.subr.mxu0 %v853_v1 }
  0xf9   : > { %1044 = vmatpush3.msra.mxu0 %v837_v3 }
  0xfa   : > { %1045 = vmatprep.subr.mxu0 %v852_v4 }
  0xfb   : > { %1046 = vmatpush3.msra.mxu0 %v836_v5 }
  0xfc   : > { %1047 = vmatprep.subr.mxu0 %v851_v6 }
  0xfd   : > { %1048 = vmatpush3.msra.mxu0 %v835_v7 }
  0xfe   : > { %1049 = vmatprep.subr.mxu0 %v850_v8 }
  0xff   : > { %1050 = vmatpush3.msra.mxu0 %v834_v9 }
 0x100   : > { %1051 = vmatprep.subr.mxu0 %v849_v10 }
 0x101   : > { %1052 = vmatpush3.msra.mxu0 %v833_v11 }
 0x102   : > { %1053 = vmatprep.subr.mxu0 %v848_v12 }
 0x103   : > { %1054 = vmatpush3.msra.mxu0 %v832_v13 }
 0x104   : > { %1055 = vmatprep.subr.mxu0 %v847_v14 }
 0x105   : > { %1056 = vmatpush3.msra.mxu0 %v831_v15 }
 0x106   : > { %1057 = vmatprep.subr.mxu0 %v846_v16 }
 0x107   : > { %1058 = vmatpush3.msra.mxu0 %v830_v17 }
 0x108   : > { %1059 = vmatprep.subr.mxu0 %v845_v18 }
 0x109   : > { %1060 = vmatpush3.msra.mxu0 %v829_v19 }
 0x10a   : > { %1061 = vmatprep.subr.mxu0 %v844_v20 }
 0x10b   : > { %1062 = vmatpush3.msra.mxu0 %v828_v23 }
 0x1ac   : > { %v728_v25 = vpop.f32.mrf.mxu0 }
 0x1ad   : > { %v729_v31 = vadd.f32 %v728_v25, %v655_v28 }
 0x1ae   : > { %v730_v27 = vpop.f32.mrf.mxu0 }
 0x1af   : > { %v731_v33 = vadd.f32 %v730_v27, %v659_v29 }
 0x1b0   : > { %v734_v30 = vpop.f32.mrf.mxu0 }
 0x1b1   : > { %v735_v38 = vadd.f32 %v734_v30, %v655_v28 }
 0x1b2   : > { %v736_v34 = vpop.f32.mrf.mxu0 }
 0x1b3   : > { %v737_v40 = vadd.f32 %v736_v34, %v659_v29 }
 0x1b4   : > { %v805_v32 = vpop.f32.mrf.mxu1 }
 0x1b5   : > { %v806_v35 = vadd.f32 %v805_v32, %v729_v31 }
 0x1b6   : > { %v807_v36 = vpop.f32.mrf.mxu1 }
 0x1b7   : > { %v808_v37 = vadd.f32 %v807_v36, %v731_v33  ;;  %v816_v42 = vmax.f32 %v806_v35, 0.0 }
 0x1b8   : > { %v811_v39 = vpop.f32.mrf.mxu1 }
 0x1b9   : > { %v817_v41 = vmax.f32 %v808_v37, 0.0  ;;  %v812_v43 = vadd.f32 %v811_v39, %v735_v38 }
 0x1ba   : > { %v813_v44 = vpop.f32.mrf.mxu1 }
 0x1bb   : > { %v814_v22 = vadd.f32 %v813_v44, %v737_v40  ;;  %931 = vmatprep.mubr.f32.mxu0 %v817_v41  ;;  %v818_v24 = vmax.f32 %v812_v43, 0.0 }
 0x1bc   : > { %932 = vmatmul.mubr.f32.vlgmr.msra.gmra.mxu0 %v816_v42 }
 0x1bd   : > { %v819_v21 = vmax.f32 %v814_v22, 0.0 }
 0x1bf   : > { %936 = vmatprep.mubr.f32.mxu0 %v819_v21 }
 0x1c0   : > { %937 = vmatmul.mubr.f32.gmra.mxu0 %v818_v24 }
 0x27c   : > { %v1063_v45 = vpop.f32.mrf.mxu0 }
 0x27e   : > { %v1064_v47 = vpop.f32.mrf.mxu0 }
 0x27f   : > { %v1065_v48 = vadd.f32 %v1064_v47, %v1063_v45 }
 0x280   : > { %v1066_v49 = vpop.f32.mrf.mxu0 }
 0x281   : > { %v934_v50 = vadd.f32 %v1065_v48, %v1028_v46 }
 0x282   : > { %v1067_v51 = vpop.f32.mrf.mxu0 }
 0x283   : > { %943 = vst.msk [vmem:[%s295_s21] sm:$0xff] %vm942_vm1, %v934_v50  ;;  %v1068_v52 = vadd.f32 %v1067_v51, %v1066_v49 }
 0x285   : > { %v939_v53 = vadd.f32 %v1068_v52, %v1028_v46 }
 0x287   : > { %944 = vst.msk [vmem:[%s295_s21 + $0x8] sm:$0xff] %vm942_vm1, %v939_v53 }
 0x288 PF: > { %s18_s24 = sadd.s32 1, %s1127_s24  }
 0x289   : > { %p15_p1 = scmp.ge.s32.totalorder %s18_s24, 4  }
 0x28b   :  { %17 = sbr.rel (!%p15_p1) target bundleno = 1 (0x1), region = 83 }
 0x290   :  { %967 = vsyncpa [#allocation5], 1 }
 0x291   :  { %969 = vsyncpa [#allocation5 + $0x1], 1 }

</bundles_post_ra>
